<compile_context>
chip_gen: v7x
topology: tpu7x:2x2x1
jax: 0.10.0
libtpu: 0.0.40
codegen_flags: <defaults>
</compile_context>

<pallas_src>
import functools

import jax
import jax.numpy as jnp
from jax import lax
from jax.experimental import pallas as pl
from jax.experimental.pallas import tpu as pltpu

NEG_BIG = -9e15                                   # same masking constant as the reference
_DN_LAST = (((1,), (1,)), ((), ()))               # contract last dim of lhs with last dim of rhs


def _elu(h):
    # exp of min(h, 0) so the untaken branch never overflows.
    return jnp.where(h > 0, h, jnp.exp(jnp.minimum(h, 0.0)) - 1.0)


def _proj_kernel(x_ref, w_all_ref, a1_ref, a2t_ref, wh_bf16_ref, wh1_ref, wh2_ref):
    """All-head projection (one bf16 MXU matmul) + batched a1/a2 attention-vector dots."""
    x = x_ref[...].astype(jnp.bfloat16)                       # (N, F)
    w = w_all_ref[...].astype(jnp.bfloat16)                    # (F, nheads*H)
    wh = jnp.dot(x, w, preferred_element_type=jnp.float32)     # (N, nheads*H) f32 accum
    wh_bf16_ref[...] = wh.astype(jnp.bfloat16)                 # value matrix for aggregation
    # Block-diagonal A1 / A2^T: 2 matmuls instead of 2*nheads tiny ones.
    wh1_ref[...] = jnp.dot(wh, a1_ref[...],
                           preferred_element_type=jnp.float32)             # (N, nheads)
    wh2_ref[...] = lax.dot_general(a2t_ref[...], wh, _DN_LAST,
                                   preferred_element_type=jnp.float32)     # (nheads, N)


def _heads_kernel(adj_ref, wh1_ref, whall_ref, wh2_ref, wout_ref, aout_ref,
                  who_ref, wh1o_ref, wh2o_ref, *, alpha, nheads, nhid):
    """nheads attention heads (concat=True) + accumulated output projection, per row tile."""
    # Hoisted mask: one int8 unpack + select per tile, reused by every head's softmax.
    bias = jnp.where(adj_ref[...] > 0, 0.0, NEG_BIG)           # (tq, N) f32 additive bias
    wh1 = wh1_ref[...]                                         # (tq, nheads) f32
    wh2 = wh2_ref[...]                                         # (nheads, N)  f32
    wh_all = whall_ref[...]                                    # (N, nheads*H) bf16 (resident)
    w_out = wout_ref[...]                                      # (nheads*H, C) bf16 (resident)
    a_out = aout_ref[...]                                      # (1, 2C) f32

    H = nhid
    C = w_out.shape[1]
    tq = bias.shape[0]

    acc = jnp.zeros((tq, C), jnp.float32)                      # x_cat @ W_out, accumulated per head
    for h in range(nheads):                                    # unrolled; nheads is small/static
        e = wh1[:, h:h + 1] + wh2[h:h + 1, :]                  # (tq, N) logits
        e = jnp.where(e > 0, e, alpha * e)                     # LeakyReLU(alpha)
        logits = e + bias
        logits = logits - jnp.max(logits, axis=1, keepdims=True)
        p = jnp.exp(logits)
        att = p * pl.reciprocal(jnp.sum(p, axis=1, keepdims=True), approx=True)
        # softmax-prob x value in bf16 with f32 accumulation (flash-attention numerics)
        h_prime = jnp.dot(att.astype(jnp.bfloat16), wh_all[:, h * H:(h + 1) * H],
                          preferred_element_type=jnp.float32)  # (tq, H)
        acc = acc + jnp.dot(_elu(h_prime).astype(jnp.bfloat16), w_out[h * H:(h + 1) * H, :],
                            preferred_element_type=jnp.float32)  # (tq, C)

    who_ref[...] = acc.astype(jnp.bfloat16)                    # Wh_o rows (value matrix downstream)
    a1o = a_out[:, :C]
    a2o = a_out[:, C:]
    wh1o_ref[...] = lax.dot_general(acc, a1o, _DN_LAST,
                                    preferred_element_type=jnp.float32)    # (tq, 1)
    wh2o_ref[...] = lax.dot_general(a2o, acc, _DN_LAST,
                                    preferred_element_type=jnp.float32)    # (1, tq) row layout


def _out_kernel(adj_ref, wh1o_ref, wh2o_ref, who_ref, o_ref, *, alpha):
    """Output attention layer (concat=False) + outer ELU + log_softmax, per row tile."""
    bias = jnp.where(adj_ref[...] > 0, 0.0, NEG_BIG)           # (tq, N)
    e = wh1o_ref[...] + wh2o_ref[...]                          # (tq,1) + (1,N)
    e = jnp.where(e > 0, e, alpha * e)
    logits = e + bias
    logits = logits - jnp.max(logits, axis=1, keepdims=True)
    p = jnp.exp(logits)
    att = p * pl.reciprocal(jnp.sum(p, axis=1, keepdims=True), approx=True)
    h_o = jnp.dot(att.astype(jnp.bfloat16), who_ref[...],
                  preferred_element_type=jnp.float32)          # (tq, C)
    y = _elu(h_o)                                              # outer F.elu
    m = jnp.max(y, axis=1, keepdims=True)
    z = y - m
    lse = jnp.log(jnp.sum(jnp.exp(z), axis=1, keepdims=True))
    o_ref[...] = z - lse                                       # log_softmax(dim=1)


def _pick_tile(n):
    # 256-row tiles keep (tile_q x N) f32 intermediates well under v7x's 64 MiB VMEM at Cora scale.
    for cand in (256, 128):
        if n % cand == 0:
            return cand
    return n


def gat_forward(x, adj, params, *, alpha, tile_q=None):
    """Full GAT forward (eval mode: dropouts are identity)."""
    nheads, F_, H = params["W_heads"].shape
    N = x.shape[0]
    C = params["W_out"].shape[1]
    K = nheads * H

    # ---- host-side, weight-only packing (tiny) ----
    W_all = jnp.transpose(params["W_heads"], (1, 0, 2)).reshape(F_, K)   # (F, nheads*H)
    a_heads = params["a_heads"]
    A1 = jnp.zeros((K, nheads), jnp.float32)
    A2T = jnp.zeros((nheads, K), jnp.float32)
    for h in range(nheads):
        A1 = A1.at[h * H:(h + 1) * H, h].set(a_heads[h, 0, :H])
        A2T = A2T.at[h, h * H:(h + 1) * H].set(a_heads[h, 0, H:])
    adj_i8 = (adj > 0).astype(jnp.int8)                                  # 4x less HBM/VMEM traffic
    W_out_bf16 = params["W_out"].astype(jnp.bfloat16)

    vmem = pl.BlockSpec(memory_space=pltpu.MemorySpace.VMEM)

    # ---- 1) projection hoisted out of the row-tiled kernels (computed once) ----
    wh_bf16, wh1_all, wh2_all = pl.pallas_call(
        _proj_kernel,
        out_shape=(jax.ShapeDtypeStruct((N, K), jnp.bfloat16),
                   jax.ShapeDtypeStruct((N, nheads), jnp.float32),
                   jax.ShapeDtypeStruct((nheads, N), jnp.float32)),
        in_specs=[vmem] * 4,
        out_specs=(vmem, vmem, vmem),
    )(x, W_all, A1, A2T)

    if tile_q is None:
        tile_q = _pick_tile(N)
    grid = (N // tile_q,)
    cparams = pltpu.CompilerParams(
        dimension_semantics=("parallel",),            # row tiles are independent (2 TCs on v7x)
        vmem_limit_bytes=48 * 1024 * 1024)            # explicit, with headroom below v7x's 64 MiB

    row_i8 = pl.BlockSpec((tile_q, N), lambda i: (i, 0))          # streamed adj row blocks
    resident = lambda shape: pl.BlockSpec(shape, lambda i: (0, 0))  # DMA'd once, stays in VMEM

    # ---- 2) heads layer: attention + accumulated output projection, tiled over query rows ----
    who_bf16, wh1o, wh2o = pl.pallas_call(
        functools.partial(_heads_kernel, alpha=alpha, nheads=nheads, nhid=H),
        grid=grid,
        out_shape=(jax.ShapeDtypeStruct((N, C), jnp.bfloat16),
                   jax.ShapeDtypeStruct((N, 1), jnp.float32),
                   jax.ShapeDtypeStruct((1, N), jnp.float32)),
        in_specs=[row_i8,
                  pl.BlockSpec((tile_q, nheads), lambda i: (i, 0)),
                  resident((N, K)),
                  resident((nheads, N)),
                  resident((K, C)),
                  resident((1, 2 * C))],
        out_specs=(pl.BlockSpec((tile_q, C), lambda i: (i, 0)),
                   pl.BlockSpec((tile_q, 1), lambda i: (i, 0)),
                   pl.BlockSpec((1, tile_q), lambda i: (0, i))),
        compiler_params=cparams,
    )(adj_i8, wh1_all, wh_bf16, wh2_all, W_out_bf16, params["a_out"])

    # ---- 3) output attention layer + elu + log_softmax, tiled over query rows ----
    out = pl.pallas_call(
        functools.partial(_out_kernel, alpha=alpha),
        grid=grid,
        out_shape=jax.ShapeDtypeStruct((N, C), jnp.float32),
        in_specs=[row_i8,
                  pl.BlockSpec((tile_q, 1), lambda i: (i, 0)),
                  resident((1, N)),
                  resident((N, C))],
        out_specs=pl.BlockSpec((tile_q, C), lambda i: (i, 0)),
        compiler_params=cparams,
    )(adj_i8, wh1o, wh2o, who_bf16)
    return out


def init_params(key, nfeat, nhid, nclass, nheads):
    """Deterministic synthetic init (shapes match GraphAttentionLayer: W [in,out], a [2*out])."""
    k1, k2, k3, k4 = jax.random.split(key, 4)
    W_heads = jax.random.normal(k1, (nheads, nfeat, nhid), jnp.float32) * 0.3
    a_heads = jax.random.normal(k2, (nheads, 1, 2 * nhid), jnp.float32) * 0.3
    W_out = jax.random.normal(k3, (nhid * nheads, nclass), jnp.float32) * 0.3
    a_out = jax.random.normal(k4, (1, 2 * nclass), jnp.float32) * 0.3
    return {"W_heads": W_heads, "a_heads": a_heads, "W_out": W_out, "a_out": a_out}


def _reference_forward(x, adj, params, *, alpha):
    """Pure-JAX reference mirroring the pyGAT math (for correctness checking)."""
    def layer(xin, W, a, concat):
        Wh = xin @ W
        H = W.shape[1]
        e = (Wh @ a[0, :H][:, None]) + (Wh @ a[0, H:][:, None]).T
        e = jnp.where(e > 0, e, alpha * e)
        logits = jnp.where(adj > 0, e, NEG_BIG)
        att = jax.nn.softmax(logits, axis=1)
        h = att @ Wh
        return jax.nn.elu(h) if concat else h

    heads = [layer(x, params["W_heads"][h], params["a_heads"][h], True)
             for h in range(params["W_heads"].shape[0])]
    x_cat = jnp.concatenate(heads, axis=1)
    out = layer(x_cat, params["W_out"], params["a_out"], False)
    return jax.nn.log_softmax(jax.nn.elu(out), axis=1)


if __name__ == "__main__":
    # small GAT config: nfeat=16, nhid=8, nclass=8, alpha=0.2, nheads=4, N=8 nodes
    N, nfeat, nhid, nclass, nheads = 8, 16, 8, 8, 4
    alpha = 0.2

    key = jax.random.PRNGKey(0)
    kx, ka, kp = jax.random.split(key, 3)

    x = jax.random.normal(kx, (N, nfeat), jnp.float32)
    # dense adjacency with self loops, symmetric, in {0,1}
    adj = (jax.random.uniform(ka, (N, N)) > 0.5).astype(jnp.float32)
    adj = jnp.maximum(adj, adj.T)
    adj = jnp.maximum(adj, jnp.eye(N, dtype=jnp.float32))

    params = init_params(kp, nfeat, nhid, nclass, nheads)

    out = gat_forward(x, adj, params, alpha=alpha)
    out = jax.block_until_ready(out)

    assert out.shape == (N, nclass)
    assert bool(jnp.all(jnp.isfinite(out)))

    ref = _reference_forward(x, adj, params, alpha=alpha)
    assert bool(jnp.allclose(out, ref, atol=2e-2, rtol=2e-2)), "mismatch vs pure-JAX reference"

    print("KERNEL_OK")
</pallas_src>

<mosaic_0001>
module attributes {stable_mosaic.version = 11 : i64} {
  func.func @_proj_kernel(%arg0: memref<8x16xf32, #tpu.memory_space<vmem>>, %arg1: memref<16x32xf32, #tpu.memory_space<vmem>>, %arg2: memref<32x4xf32, #tpu.memory_space<vmem>>, %arg3: memref<4x32xf32, #tpu.memory_space<vmem>>, %arg4: memref<8x32xbf16, #tpu.memory_space<vmem>>, %arg5: memref<8x4xf32, #tpu.memory_space<vmem>>, %arg6: memref<4x8xf32, #tpu.memory_space<vmem>>) attributes {dimension_semantics = [], scalar_prefetch = 0 : i64, scratch_operands = 0 : i64, tpu.core_type = #tpu.core_type<tc>} {
    %c0 = arith.constant 0 : index
    %c0_0 = arith.constant 0 : index
    %0 = vector.load %arg0[%c0, %c0_0] : memref<8x16xf32, #tpu.memory_space<vmem>>, vector<8x16xf32>
    %1 = arith.truncf %0 : vector<8x16xf32> to vector<8x16xbf16>
    %c0_1 = arith.constant 0 : index
    %c0_2 = arith.constant 0 : index
    %2 = vector.load %arg1[%c0_1, %c0_2] : memref<16x32xf32, #tpu.memory_space<vmem>>, vector<16x32xf32>
    %3 = arith.truncf %2 : vector<16x32xf32> to vector<16x32xbf16>
    %cst = arith.constant dense<0.000000e+00> : vector<8x32xf32>
    %4 = tpu.matmul %1, %3, %cst {dimension_numbers = #tpu.dot_dimension_numbers<[1], [0], [0], [1], [0, 0, 1, 1], [], []>} : vector<8x16xbf16>, vector<16x32xbf16>, vector<8x32xf32> -> vector<8x32xf32>
    %5 = arith.truncf %4 : vector<8x32xf32> to vector<8x32xbf16>
    %c0_3 = arith.constant 0 : index
    %c0_4 = arith.constant 0 : index
    %6 = vector.load %arg4[%c0_3, %c0_4] : memref<8x32xbf16, #tpu.memory_space<vmem>>, vector<8x32xbf16>
    tpu.vector_store %arg4[%c0_3, %c0_4], %5 {strides = array<i32>} : memref<8x32xbf16, #tpu.memory_space<vmem>>, vector<8x32xbf16>,
    %c0_5 = arith.constant 0 : index
    %c0_6 = arith.constant 0 : index
    %7 = vector.load %arg2[%c0_5, %c0_6] : memref<32x4xf32, #tpu.memory_space<vmem>>, vector<32x4xf32>
    %cst_7 = arith.constant dense<0.000000e+00> : vector<8x4xf32>
    %8 = tpu.matmul %4, %7, %cst_7 {dimension_numbers = #tpu.dot_dimension_numbers<[1], [0], [0], [1], [0, 0, 1, 1], [], []>} : vector<8x32xf32>, vector<32x4xf32>, vector<8x4xf32> -> vector<8x4xf32>
    %c0_8 = arith.constant 0 : index
    %c0_9 = arith.constant 0 : index
    %9 = vector.load %arg5[%c0_8, %c0_9] : memref<8x4xf32, #tpu.memory_space<vmem>>, vector<8x4xf32>
    tpu.vector_store %arg5[%c0_8, %c0_9], %8 {strides = array<i32>} : memref<8x4xf32, #tpu.memory_space<vmem>>, vector<8x4xf32>,
    %c0_10 = arith.constant 0 : index
    %c0_11 = arith.constant 0 : index
    %10 = vector.load %arg3[%c0_10, %c0_11] : memref<4x32xf32, #tpu.memory_space<vmem>>, vector<4x32xf32>
    %cst_12 = arith.constant dense<0.000000e+00> : vector<4x8xf32>
    %11 = tpu.matmul %10, %4, %cst_12 {dimension_numbers = #tpu.dot_dimension_numbers<[1], [1], [0], [0], [0, 0, 1, 0], [], []>} : vector<4x32xf32>, vector<8x32xf32>, vector<4x8xf32> -> vector<4x8xf32>
    %c0_13 = arith.constant 0 : index
    %c0_14 = arith.constant 0 : index
    %12 = vector.load %arg6[%c0_13, %c0_14] : memref<4x8xf32, #tpu.memory_space<vmem>>, vector<4x8xf32>
    tpu.vector_store %arg6[%c0_13, %c0_14], %11 {strides = array<i32>} : memref<4x8xf32, #tpu.memory_space<vmem>>, vector<4x8xf32>,
    return
  }
}

</mosaic_0001>

<bundles_post_ra>
// kernel: tpu_custom_call.1
= control target key start
LH: loop header
LB: loop body
LE: loop exit
PB: predicated region body
PF: predicated region fallthrough
CT: control target
= control target key end

     0   :  { %12 = vsyncpa [#allocation3], 0  ;;  %v357_v3 = vmov 0.0   ;;  %vm358_vm0 = vmmov 0   ;;  %v359_v9 = vmov 0.0|0.0   ;;  %s451_s0 = inlined_call_operand.vmem [shape: f32[8,16], index: 0, kind: input, shape index: {}]   ;;  %s452_s1 = inlined_call_operand.vmem [shape: f32[16,32], index: 1, kind: input, shape index: {}]   ;;  %s453_s2 = inlined_call_operand.vmem [shape: f32[32,4], index: 2, kind: input, shape index: {}]   ;;  %s454_s3 = inlined_call_operand.vmem [shape: f32[4,32], index: 3, kind: input, shape index: {}]   ;;  %s455_s4 = inlined_call_operand.hbm [shape: bf16[8,32], index: 4, kind: output, shape index: {0}]   ;;  %s456_s5 = inlined_call_operand.vmem [shape: f32[8,4], index: 5, kind: output, shape index: {1}]   ;;  %s457_s6 = inlined_call_operand.hbm [shape: f32[4,8], index: 6, kind: output, shape index: {2}]  }
   0x1   :  { %v25_v0 = vld [vmem:[%s452_s1] sm:$0xff]  ;;  %v26_v1 = vld [vmem:[%s452_s1 + $0x8] sm:$0xff]  ;;  %276 = vmatprep.subr.bf16.mxu0 %v357_v3  ;;  %278 = vmatprep.mubr.msk.bf16.mxu0 %vm358_vm0, %v357_v3  ;;  %v77_v7 = vld [vmem:[%s453_s2 + $0x10] sm:$0xff] }
   0x2   :  { %v23_v2 = vld [vmem:[%s451_s0] sm:$0xff]  ;;  %v27_v4 = vpack.c.bf16 %v26_v1, %v25_v0  ;;  %v76_v6 = vld [vmem:[%s453_s2 + $0x8] sm:$0xff]  ;;  %298 = vmatprep.subr.bf16.mxu1 %v359_v9  ;;  %v78_v11 = vld [vmem:[%s453_s2 + $0x18] sm:$0xff]  ;;  %290 = vmatprep.mubr.msk.f32.mxu1 %vm358_vm0, %v357_v3 }
   0x3   :  { %v75_v5 = vld [vmem:[%s453_s2] sm:$0xff]  ;;  %v24_v8 = vpack.c.bf16 %v23_v2, %v23_v2 }
   0x4   :  { %v299_v10 = vpack.c.bf16 %v76_v6, %v75_v5 }
   0x5   :  { %13 = vsyncpa [#allocation5], 0  ;;  %277 = vmatpush3.bf16.msra.mxu0 %v27_v4  ;;  %vm28_vm1 = vcmask 130048   ;;  %v302_v12 = vpack.c.bf16 %v78_v11, %v77_v7  ;;  %vm79_vm2 = vcmask 261120   ;;  %vm73_vm3 = vcmask 257024   ;;  %s360_s10 = smov [#allocation2]  }
   0x6   :  { %300 = vmatpush3.bf16.msra.mxu1 %v299_v10  ;;  %293 = vmatprep.subr.mxu0 %v357_v3  ;;  %v155_v15 = vld [vmem:[%s454_s3] sm:$0xf]  ;;  %s237_s11 = sshll.u32 %s360_s10, 4  ;;  %s238_s11 = int_to_ptr.vmem [resolvable:$true] %s237_s11 }
   0x7   :  { %301 = vmatprep.subr.bf16.mxu1 %v359_v9  ;;  %s309_s12 = scalar_lea.vmem %s238_s11, 64  ;;  %p314_p1 = scmp.lt.s32.totalorder %s238_s11, %s238_s11 }
   0x8   :  { %279 = vmatmul.mubr.msk.bf16.vlgmr.msra.gmra.mrb[0].mxu0 %vm28_vm1, %v24_v8  ;;  %p310_p0 = scmp.ne.s32.totalorder %s238_s11, %s309_s12  ;;  %p315_p2 = scmp.lt.s32.totalorder %s309_s12, %s309_s12 }
   0x9   :  { %295 = vmatprep.mubr.msk.f32.mxu0 %vm358_vm0, %v357_v3 }
   0xa   :  { %303 = vmatpush3.bf16.msra.mxu1 %v302_v12  ;;  %p316_p3 = por %p315_p2, %p314_p1 }
   0xc   :  { %p317_p4 = pnand %p316_p3, %p310_p0 }
  0xdb   :  { %v66_v13 = vpop.f32.mrb[0].mxu0 }
  0xdc   :  { %v280_v14 = vpop.f32.mrb[1].mxu0  ;;  %291 = vmatmul.mubr.msk.f32.vlgmr.msra.gmra.mrb[0].mxu1 %vm79_vm2, %v66_v13  ;;  %294 = vmatpush3.xpose.msk.msra.mxu0 %vm79_vm2, %v66_v13  ;;  %v72_v16 = vpack.c.bf16 %v66_v13, %v66_v13 }
  0xdd   :  { %v69_v17 = vpop.f32.mrb[2].mxu0 }
  0xde   :  { %v281_v18 = vpop.f32.mrb[3].mxu0  ;;  %74 = vst.msk [vmem:[#allocation2] sm:$0xf] %vm73_vm3, %v72_v16 }
  0xdf   :  { %296 = vmatmul.mubr.msk.f32.vlgmr.msra.gmra.mrb[4].mxu0 %vm79_vm2, %v155_v15 }
  0xe0   :  { %320 = shalt.err (!%p317_p4)
}
  0xe1   :  { %s321_s15 = scalar_lea.hbm %s455_s4, 64 }
  0xe2   :  { %p322_p5 = scmp.ne.s32.totalorder %s455_s4, %s321_s15  ;;  %p325_p6 = scmp.lt.u32.totalorder %s321_s15, %s455_s4 }
  0xe4   :  { %p327_p7 = pnand %p325_p6, %p322_p5 }
  0xe6   :  { %330 = shalt.err (!%p327_p7)
}
  0xe7   :  { %240 = dma.vmem_to_hbm [thread:$0]  %s238_s11, 64, %s455_s4, [#allocation3]   ;;  %vm153_vm4 = vcmask 31744   ;;  %vm229_vm5 = vcmask 60416  }
  0xe8   :  { %s361_s21 = smov [#allocation4]  }
  0xe9   :  { %s249_s22 = sshll.u32 %s361_s21, 4  ;;  %s250_s22 = int_to_ptr.vmem [resolvable:$true] %s249_s22 }
  0xea   :  { %s331_s25 = scalar_lea.vmem %s250_s22, 64  ;;  %p336_p9 = scmp.lt.s32.totalorder %s250_s22, %s250_s22 }
  0xeb   :  { %p332_p8 = scmp.ne.s32.totalorder %s250_s22, %s331_s25  ;;  %p337_p10 = scmp.lt.s32.totalorder %s331_s25, %s331_s25 }
  0xed   :  { %p338_p11 = por %p337_p10, %p336_p9 }
  0xef   :  { %p339_p12 = pnand %p338_p11, %p332_p8 }
 0x1af   :  { %v149_v19 = vpop.f32.mrb[0].mxu1 }
 0x1b0   :  { %154 = vst.msk [vmem:[%s456_s5] sm:$0xff] %vm153_vm4, %v149_v19  ;;  %v292_v20 = vpop.f32.mrb[1].mxu1 }
 0x1b2   :  { %v225_v21 = vpop.f32.mrb[4].mxu0 }
 0x1b3   :  { %230 = vst.msk [vmem:[#allocation4] sm:$0xf] %vm229_vm5, %v225_v21  ;;  %v297_v22 = vpop.f32.mrb[5].mxu0 }
 0x1b4   :  { %342 = shalt.err (!%p339_p12)
}
 0x1b5   :  { %s343_s27 = scalar_lea.hbm %s457_s6, 64 }
 0x1b6   :  { %p344_p13 = scmp.ne.s32.totalorder %s457_s6, %s343_s27  ;;  %p347_p0 = scmp.lt.u32.totalorder %s343_s27, %s457_s6 }
 0x1b8   :  { %p349_p1 = pnand %p347_p0, %p344_p13 }
 0x1ba   :  { %352 = shalt.err (!%p349_p1)
}
 0x1bb   :  { %252 = dma.vmem_to_hbm [thread:$0]  %s250_s22, 64, %s457_s6, [#allocation5]  }
 0x1bc   :  { %353 = dma.done.wait [#allocation3], 64  }
 0x1bd   :  { %354 = vsyncadd [#allocation3], 4294967232 }
 0x1be   :  { %355 = dma.done.wait [#allocation5], 64  }
 0x1bf   :  { %356 = vsyncadd [#allocation5], 4294967232 }
 0x1c0   :  { %261 = vsyncpa [#allocation3], 1 }
 0x1c1   :  { %262 = vsyncpa [#allocation5], 1 }

</bundles_post_ra>
